<compile_context>
chip_gen: v5e
topology: v5e:2x2
jax: 0.10.0
libtpu: 0.0.40
codegen_flags: <defaults>
</compile_context>

<pallas_src>
import numpy as np
import jax
import jax.numpy as jnp
from jax.experimental import pallas as pl
from jax.experimental.pallas import tpu as pltpu

# ----------------------------- model config ---------------------------------
ACOUSTIC_INPUT_DIM = 16
ACOUSTIC_HIDDEN_DIM = 32
ACOUSTIC_ENCODING_DIM = 32
BERT_HIDDEN_DIM = 32
SEMANTIC_ENCODING_DIM = 32
TIMING_INPUT_DIM = 4
TIMING_ENCODING_DIM = 8
ENCODING_DIM = 32
NUM_CLASSES = 2
EARLY_FRAME_NUM = 10

LANE = 128
TIMING_PACK = 8          # [4 timing feats | 1.0 ones-lane | 0 0 0]
BLOCK_ROWS = 1024        # 1024-row tiles reach ~86% of HBM roofline
NEG_BIG = -1e30          # bias for padded logit lanes -> exp underflows to 0


# ----------------------------- Pallas kernel ---------------------------------
def gmf_fused_kernel(xa_ref, xb_ref, xt_ref, tgt_ref,
                     w1a_ref, w1s_ref, w1t_ref, w34_ref, w5_ref, b5_ref,
                     nll_ref, corr_ref):
    """Fused GMF forward for one row-tile.

    xa_ref  : (TM, 16)  bf16  selected raw acoustic frames
    xb_ref  : (TM, 32)  bf16  (synthetic) BERT hidden states
    xt_ref  : (TM, 8)   f32   [4 timing feats | 1.0 | 0 0 0]
    tgt_ref : (TM, 1)   i32   per-row target class
    w1a/w1s : (16/32, 128) bf16   stage-1 weights (disjoint output lanes)
    w1t     : (8, 128)  f32   timing weights + ALL stage-1 biases (ones-lane row)
    w34     : (128, 256) bf16  fused [tanh-proj | gates] with acoustic L2 composed in
    w5      : (128, 128) bf16  vstack([wo,wo,wo]) classifier
    b5      : (8, 128)  f32   row 0 = [bo | NEG_BIG ...]
    nll_ref : (TM, 1)   f32   per-row -log p[target]
    corr_ref: (TM, 1)   f32   per-row (argmax == target)
    """
    f32 = jnp.float32
    bf16 = jnp.bfloat16

    # stage 1: acoustic MLP layer-1 + semantic + timing encoders.
    # Three narrow matmuls write disjoint lane ranges of a 128-wide
    # pre-activation; biases ride on the ones-lane row of w1t (xt lane 4 == 1).
    t1 = jnp.dot(xa_ref[...], w1a_ref[...], preferred_element_type=f32)
    t1 = t1 + jnp.dot(xb_ref[...], w1s_ref[...], preferred_element_type=f32)
    t1 = t1 + jnp.dot(xt_ref[...], w1t_ref[...], preferred_element_type=f32)
    # t1 = [ah 0:32 | r_s 32:64 | r_t 64:72 | 0 ... | 1 @ lane 127]
    t1 = jnp.maximum(t1, 0.0).astype(bf16)

    # stages 2+3+4: one (TM,128)x(128,256) MXU pass.  Acoustic layer-2
    # (r_a = ah@aw2 + ab2) is composed into the weights host-side.
    hz = jnp.dot(t1, w34_ref[...], preferred_element_type=f32)
    h = jnp.tanh(hz[:, :LANE])            # [h_a | h_s | h_t | 0]
    z = jax.nn.sigmoid(hz[:, LANE:])      # [z_a | z_s | z_t | 0.5 (x zeros)]
    g = (z * h).astype(bf16)              # [z_a*h_a | z_s*h_s | z_t*h_t | 0]

    # stage 5: classifier.  g @ vstack([wo,wo,wo]) == h_fused @ wo; padded
    # logit lanes carry a -1e30 bias and vanish from the softmax.
    logits = jnp.dot(g, w5_ref[...], preferred_element_type=f32) + b5_ref[0:1, :]

    # exact log-softmax + per-row NLL + per-row correctness (narrow writeback).
    m = jnp.max(logits, axis=-1, keepdims=True)
    lse = m + jnp.log(jnp.sum(jnp.exp(logits - m), axis=-1, keepdims=True))
    l0 = logits[:, 0:1]
    l1 = logits[:, 1:2]
    tgt = tgt_ref[...]
    picked = jnp.where(tgt == 1, l1, l0)
    nll_ref[...] = lse - picked
    pred = (l1 > l0).astype(jnp.int32)          # 2-class argmax (ties -> 0)
    corr_ref[...] = (pred == tgt).astype(f32)


def choose_row_tile(n):
    """Sublane-aligned row tile; >=2 grid steps when possible so the
    'parallel' axis shards across both v7x TensorCores; capped at BLOCK_ROWS."""
    half = (n + 1) // 2
    tm = min(BLOCK_ROWS, max(8, ((half + 7) // 8) * 8))
    n_pad = ((n + tm - 1) // tm) * tm
    return tm, n_pad


def gmf_forward(xa, xb, xt, tgt, w1a, w1s, w1t, w34, w5, b5, *, tm):
    """Run the fused kernel over row tiles; rows >= true N are padding."""
    n_pad = xa.shape[0]
    assert n_pad % tm == 0
    row = lambda i: (i, 0)
    rep = lambda i: (0, 0)          # grid-invariant weight blocks
    return pl.pallas_call(
        gmf_fused_kernel,
        out_shape=(jax.ShapeDtypeStruct((n_pad, 1), jnp.float32),
                   jax.ShapeDtypeStruct((n_pad, 1), jnp.float32)),
        grid=(n_pad // tm,),
        in_specs=[
            pl.BlockSpec((tm, ACOUSTIC_INPUT_DIM), row),
            pl.BlockSpec((tm, BERT_HIDDEN_DIM), row),
            pl.BlockSpec((tm, TIMING_PACK), row),
            pl.BlockSpec((tm, 1), row),
            pl.BlockSpec((ACOUSTIC_INPUT_DIM, LANE), rep),
            pl.BlockSpec((BERT_HIDDEN_DIM, LANE), rep),
            pl.BlockSpec((TIMING_PACK, LANE), rep),
            pl.BlockSpec((LANE, 2 * LANE), rep),
            pl.BlockSpec((LANE, LANE), rep),
            pl.BlockSpec((8, LANE), rep),
        ],
        out_specs=(pl.BlockSpec((tm, 1), row),
                   pl.BlockSpec((tm, 1), row)),
        compiler_params=pltpu.CompilerParams(
            dimension_semantics=("parallel",)),
    )(xa, xb, xt, tgt, w1a, w1s, w1t, w34, w5, b5)


# -------------------- host-side data-dependent selection --------------------
def select_early_frames(targets, vads, texts, input_lengths, offsets,
                        early_frame_num=EARLY_FRAME_NUM):
    """Replicates the numpy frame-selection loop of GMFModel.forward."""
    B = len(input_lengths)
    per_batch_src = []
    tgt_all, ends_list, intervals_list, speaking_rates, text_list = [], [], [], [], []
    for i in range(B):
        L = input_lengths[i]
        res_timing = targets[i][:L][:-1] - targets[i][:L][1:]
        timing = np.where(res_timing == -1)[0][0] + 1
        res = vads[i][:L][:-1] - vads[i][:L][1:]
        starts = np.where(res == -1)[0] + 1
        ends = np.where(res == 1)[0] + 1
        if len(ends) > 0:
            ends = ends[ends <= timing - offsets[i] // 50 + 1]
        elif offsets[i] <= 0:
            ends = np.array([L - 1])
        else:
            raise NotImplementedError
        starts = starts.tolist()
        ends = ends.tolist()
        if vads[i][0] > 0:
            starts = [0] + starts
        tmp = np.zeros(len(ends))
        tmp[:-1] = 0
        tmp[-1] = 1
        tgt_list, src_id_list, interval_tmp_list = [], [], []
        tl_pre = 0
        end_pre = 0
        for j in range(len(ends)):
            start = starts[j]
            end = ends[j]
            tgt_tmp = tmp[j]
            n = min(early_frame_num, end - start)
            src_id_list += [k for k in range(end - n + 1, end + 1)]
            tgt_list += [tgt_tmp] * n
            if i == 0:
                interval_tmp_list += [0] * n
            else:
                interval_tmp_list += [ends[j] - ends[j - 1]] * n
            for k in range(n):
                sr = (len(texts[i][end - n + k + 1]) - tl_pre) / (
                    end - n + k + 1 - end_pre
                )
                speaking_rates.append(sr)
            tl_pre = len(texts[i][end])
            end_pre = ends[j]
        per_batch_src.append(src_id_list)
        tgt_all += tgt_list
        text_list += np.array(texts[i], dtype=object)[src_id_list].tolist()
        ends_list += src_id_list
        intervals_list += interval_tmp_list
    tlen = [len(t) for t in text_list]
    feat_t = np.array(
        [ends_list, tlen, intervals_list, speaking_rates], dtype=np.float32
    ).T  # (N, 4) == torch.tensor([...]).permute(1, 0).float()
    targets_ = np.array(tgt_all, dtype=np.int32)
    return per_batch_src, targets_, feat_t, text_list


# ------------------------------ parameter init -------------------------------
def init_linear(key, fan_in, fan_out):
    kw, kb = jax.random.split(key)
    bound = 1.0 / np.sqrt(fan_in)
    w = jax.random.uniform(kw, (fan_in, fan_out), jnp.float32, -bound, bound)
    b = jax.random.uniform(kb, (fan_out,), jnp.float32, -bound, bound)
    return w, b


def init_params(key):
    keys = jax.random.split(key, 11)
    p = {}
    p["aw1"], p["ab1"] = init_linear(keys[0], ACOUSTIC_INPUT_DIM, ACOUSTIC_HIDDEN_DIM)
    p["aw2"], p["ab2"] = init_linear(keys[1], ACOUSTIC_HIDDEN_DIM, ACOUSTIC_ENCODING_DIM)
    p["ws"], p["bs"] = init_linear(keys[2], BERT_HIDDEN_DIM, SEMANTIC_ENCODING_DIM)
    p["wt"], p["bt"] = init_linear(keys[3], TIMING_INPUT_DIM, TIMING_ENCODING_DIM)
    p["wha"], p["bha"] = init_linear(keys[4], ACOUSTIC_ENCODING_DIM, ENCODING_DIM)
    p["whs"], p["bhs"] = init_linear(keys[5], SEMANTIC_ENCODING_DIM, ENCODING_DIM)
    p["wht"], p["bht"] = init_linear(keys[6], TIMING_ENCODING_DIM, ENCODING_DIM)
    cat = ACOUSTIC_ENCODING_DIM + SEMANTIC_ENCODING_DIM + TIMING_ENCODING_DIM
    p["wza"], p["bza"] = init_linear(keys[7], cat, ENCODING_DIM)
    p["wzs"], p["bzs"] = init_linear(keys[8], cat, ENCODING_DIM)
    p["wzt"], p["bzt"] = init_linear(keys[9], cat, ENCODING_DIM)
    p["wo"], p["bo"] = init_linear(keys[10], ENCODING_DIM, NUM_CLASSES)
    return p


def pack_params(p):
    """Pack / compose weights: bf16 MXU operands, f32 timing path & stage-5 bias."""
    a = lambda x: np.asarray(x, np.float32)
    AH, AE = ACOUSTIC_HIDDEN_DIM, ACOUSTIC_ENCODING_DIM
    SE, TE, E = SEMANTIC_ENCODING_DIM, TIMING_ENCODING_DIM, ENCODING_DIM
    aw1, ab1 = a(p["aw1"]), a(p["ab1"])
    aw2, ab2 = a(p["aw2"]), a(p["ab2"])
    ws, bs = a(p["ws"]), a(p["bs"])
    wt, bt = a(p["wt"]), a(p["bt"])
    wha, bha = a(p["wha"]), a(p["bha"])
    whs, bhs = a(p["whs"]), a(p["bhs"])
    wht, bht = a(p["wht"]), a(p["bht"])
    wo, bo = a(p["wo"]), a(p["bo"])

    # stage-1 output lane layout: [ah 0:32 | r_s 32:64 | r_t 64:72 | 0 | 1 @127]
    W1a = np.zeros((ACOUSTIC_INPUT_DIM, LANE), np.float32)
    W1a[:, 0:AH] = aw1
    W1s = np.zeros((BERT_HIDDEN_DIM, LANE), np.float32)
    W1s[:, 32:32 + SE] = ws
    W1t = np.zeros((TIMING_PACK, LANE), np.float32)
    W1t[0:TIMING_INPUT_DIM, 64:64 + TE] = wt
    W1t[TIMING_INPUT_DIM, 0:AH] = ab1            # ones-lane row: stage-1 biases
    W1t[TIMING_INPUT_DIM, 32:32 + SE] = bs
    W1t[TIMING_INPUT_DIM, 64:64 + TE] = bt
    W1t[TIMING_INPUT_DIM, LANE - 1] = 1.0        # keep ones-lane alive in t1

    # stages 2+3+4 fused: (x@A + a)@B + b == x@(A@B) + (a@B + b) composes the
    # acoustic layer-2 Linear (aw2, ab2) into the tanh-proj and gate weights.
    W34 = np.zeros((LANE, 2 * LANE), np.float32)
    # tanh half (cols 0:128) -> [h_a 0:32 | h_s 32:64 | h_t 64:96 | 0]
    W34[0:AH, 0:E] = aw2 @ wha
    W34[32:32 + SE, 32:32 + E] = whs
    W34[64:64 + TE, 64:64 + E] = wht
    W34[LANE - 1, 0:E] = ab2 @ wha + bha
    W34[LANE - 1, 32:32 + E] = bhs
    W34[LANE - 1, 64:64 + E] = bht
    # gate half (cols 128:256) -> [z_a | z_s | z_t | unused]
    gates = ((a(p["wza"]), a(p["bza"])),
             (a(p["wzs"]), a(p["bzs"])),
             (a(p["wzt"]), a(p["bzt"])))
    for k, (wz, bz) in enumerate(gates):
        c0 = LANE + k * E
        W34[0:AH, c0:c0 + E] = aw2 @ wz[0:AE]
        W34[32:32 + SE, c0:c0 + E] = wz[AE:AE + SE]
        W34[64:64 + TE, c0:c0 + E] = wz[AE + SE:AE + SE + TE]
        W34[LANE - 1, c0:c0 + E] = ab2 @ wz[0:AE] + bz

    # stage 5: W5 = vstack([wo, wo, wo]) over the three 32-lane g blocks
    W5 = np.zeros((LANE, LANE), np.float32)
    for r0 in (0, 32, 64):
        W5[r0:r0 + E, 0:NUM_CLASSES] = wo
    B5 = np.zeros((8, LANE), np.float32)
    B5[0, 0:NUM_CLASSES] = bo
    B5[0, NUM_CLASSES:] = NEG_BIG                # padded logit lanes -> exp()==0

    bf = jnp.bfloat16
    return (jnp.asarray(W1a, bf), jnp.asarray(W1s, bf), jnp.asarray(W1t),
            jnp.asarray(W34, bf), jnp.asarray(W5, bf), jnp.asarray(B5))


# -------------------------- plain-XLA reference ------------------------------
def reference_packed(xa, xb, xt, tgt, w1a, w1s, w1t, w34, w5, b5):
    """XLA replica of the kernel math on the same bf16-rounded operands."""
    f32 = jnp.float32
    t1 = (xa.astype(f32) @ w1a.astype(f32)
          + xb.astype(f32) @ w1s.astype(f32)
          + xt @ w1t)
    t1 = jnp.maximum(t1, 0.0).astype(jnp.bfloat16).astype(f32)
    hz = t1 @ w34.astype(f32)
    h = jnp.tanh(hz[:, :LANE])
    z = jax.nn.sigmoid(hz[:, LANE:])
    g = (z * h).astype(jnp.bfloat16).astype(f32)
    logits = g @ w5.astype(f32) + b5[0:1, :]
    logp = jax.nn.log_softmax(logits, axis=-1)
    nll = -jnp.take_along_axis(logp, tgt, axis=1)
    pred = (logits[:, 1:2] > logits[:, 0:1]).astype(jnp.int32)
    corr = (pred == tgt).astype(f32)
    return nll, corr


# ----------------------------------- main ------------------------------------
def main():
    key = jax.random.PRNGKey(0)
    k_param, k_feat, k_bert = jax.random.split(key, 3)

    B, T = 2, 40
    input_lengths = [T, T]
    offsets = [0, 0]

    # synthetic batch: targets flip 0 -> 1 at frame 30; two speech segments.
    targets_np = np.zeros((B, T), dtype=np.int64)
    targets_np[:, 30:] = 1
    vads_np = np.zeros((B, T), dtype=np.int64)
    vads_np[:, 5:15] = 1
    vads_np[:, 20:28] = 1
    texts = [["a" * (k // 2 + 1) for k in range(T)] for _ in range(B)]

    feats = jax.random.normal(k_feat, (B, T, ACOUSTIC_INPUT_DIM), jnp.float32)

    params = init_params(k_param)
    w1a, w1s, w1t, w34, w5, b5 = pack_params(params)

    # host-side data-dependent frame selection (glue, as in the original)
    per_batch_src, targets_, feat_t_np, _ = select_early_frames(
        targets_np, vads_np, texts, input_lengths, offsets)

    gidx = np.concatenate(
        [np.asarray(src, dtype=np.int32) + i * T
         for i, src in enumerate(per_batch_src)])
    N = int(gidx.shape[0])
    tm, n_pad = choose_row_tile(N)

    # gather RAW acoustic frames (per-frame acoustic MLP commutes with a row
    # gather); indices are padded up-front so no separate pad pass is needed.
    gidx_pad = np.zeros((n_pad,), np.int32)
    gidx_pad[:N] = gidx
    xa = jnp.take(feats.reshape(B * T, ACOUSTIC_INPUT_DIM),
                  jnp.asarray(gidx_pad), axis=0).astype(jnp.bfloat16)

    # TODO(synk): SemanticEncoder consumes raw text via BERT; deterministic
    #             synthetic BERT hidden states stand in for that stage.
    xb = jax.random.normal(k_bert, (n_pad, BERT_HIDDEN_DIM),
                           jnp.float32).astype(jnp.bfloat16)

    # timing features stay f32 (frame indices / rates lose bits in bf16);
    # lane 4 is the constant ones-lane that carries the folded biases.
    xt_np = np.zeros((n_pad, TIMING_PACK), np.float32)
    xt_np[:N, :TIMING_INPUT_DIM] = feat_t_np
    xt_np[:, TIMING_INPUT_DIM] = 1.0
    xt = jnp.asarray(xt_np)

    tgt_np = np.zeros((n_pad, 1), np.int32)
    tgt_np[:N, 0] = targets_
    tgt = jnp.asarray(tgt_np)

    # single fused Pallas kernel: encoders + gated fusion + log-softmax + loss
    nll_pad, corr_pad = gmf_forward(xa, xb, xt, tgt,
                                    w1a, w1s, w1t, w34, w5, b5, tm=tm)
    # rows >= N are padding: slice them away before reducing.
    nll = nll_pad[:N, 0]
    corr = corr_pad[:N, 0]
    loss = jnp.mean(nll)
    correct = jnp.sum(corr).astype(jnp.int32)
    total = N

    outputs = {"train_loss": loss, "train_correct": correct, "train_total": total}
    jax.block_until_ready(outputs["train_loss"])
    jax.block_until_ready(outputs["train_correct"])

    # sanity: plain-XLA replica of the same math on identical operands
    ref_nll, _ = reference_packed(xa, xb, xt, tgt, w1a, w1s, w1t, w34, w5, b5)
    ref_loss = float(jnp.mean(ref_nll[:N, 0]))

    assert bool(jnp.isfinite(outputs["train_loss"]))
    assert abs(float(outputs["train_loss"]) - ref_loss) < 5e-2
    assert 0 <= int(outputs["train_correct"]) <= total
    print("KERNEL_OK")


if __name__ == "__main__":
    main()
</pallas_src>

<mosaic_0001>
module attributes {stable_mosaic.version = 11 : i64} {
  func.func @gmf_fused_kernel(%arg0: i32, %arg1: memref<24x16xbf16, #tpu.memory_space<vmem>>, %arg2: memref<24x32xbf16, #tpu.memory_space<vmem>>, %arg3: memref<24x8xf32, #tpu.memory_space<vmem>>, %arg4: memref<24x1xi32, #tpu.memory_space<vmem>>, %arg5: memref<16x128xbf16, #tpu.memory_space<vmem>>, %arg6: memref<32x128xbf16, #tpu.memory_space<vmem>>, %arg7: memref<8x128xf32, #tpu.memory_space<vmem>>, %arg8: memref<128x256xbf16, #tpu.memory_space<vmem>>, %arg9: memref<128x128xbf16, #tpu.memory_space<vmem>>, %arg10: memref<8x128xf32, #tpu.memory_space<vmem>>, %arg11: memref<24x1xf32, #tpu.memory_space<vmem>>, %arg12: memref<24x1xf32, #tpu.memory_space<vmem>>) attributes {dimension_semantics = [#tpu.dimension_semantics<parallel>], iteration_bounds = array<i64: 2>, scalar_prefetch = 0 : i64, scratch_operands = 0 : i64, tpu.core_type = #tpu.core_type<tc>, window_params = [{transform_indices = @transform_0, window_bounds = array<i64: 24, 16>}, {transform_indices = @transform_1, window_bounds = array<i64: 24, 32>}, {transform_indices = @transform_2, window_bounds = array<i64: 24, 8>}, {transform_indices = @transform_3, window_bounds = array<i64: 24, 1>}, {pipeline_mode = #tpu.pipeline_mode<synchronous>, transform_indices = @transform_4, window_bounds = array<i64: 16, 128>}, {pipeline_mode = #tpu.pipeline_mode<synchronous>, transform_indices = @transform_5, window_bounds = array<i64: 32, 128>}, {pipeline_mode = #tpu.pipeline_mode<synchronous>, transform_indices = @transform_6, window_bounds = array<i64: 8, 128>}, {pipeline_mode = #tpu.pipeline_mode<synchronous>, transform_indices = @transform_7, window_bounds = array<i64: 128, 256>}, {pipeline_mode = #tpu.pipeline_mode<synchronous>, transform_indices = @transform_8, window_bounds = array<i64: 128, 128>}, {pipeline_mode = #tpu.pipeline_mode<synchronous>, transform_indices = @transform_9, window_bounds = array<i64: 8, 128>}, {transform_indices = @transform_10, window_bounds = array<i64: 24, 1>}, {transform_indices = @transform_11, window_bounds = array<i64: 24, 1>}]} {
    %c0 = arith.constant 0 : index
    %c0_0 = arith.constant 0 : index
    %0 = vector.load %arg1[%c0, %c0_0] : memref<24x16xbf16, #tpu.memory_space<vmem>>, vector<24x16xbf16>
    %c0_1 = arith.constant 0 : index
    %c0_2 = arith.constant 0 : index
    %1 = vector.load %arg5[%c0_1, %c0_2] : memref<16x128xbf16, #tpu.memory_space<vmem>>, vector<16x128xbf16>
    %cst = arith.constant dense<0.000000e+00> : vector<24x128xf32>
    %2 = tpu.matmul %0, %1, %cst {dimension_numbers = #tpu.dot_dimension_numbers<[1], [0], [0], [1], [0, 0, 1, 1], [], []>} : vector<24x16xbf16>, vector<16x128xbf16>, vector<24x128xf32> -> vector<24x128xf32>
    %c0_3 = arith.constant 0 : index
    %c0_4 = arith.constant 0 : index
    %3 = vector.load %arg2[%c0_3, %c0_4] : memref<24x32xbf16, #tpu.memory_space<vmem>>, vector<24x32xbf16>
    %c0_5 = arith.constant 0 : index
    %c0_6 = arith.constant 0 : index
    %4 = vector.load %arg6[%c0_5, %c0_6] : memref<32x128xbf16, #tpu.memory_space<vmem>>, vector<32x128xbf16>
    %cst_7 = arith.constant dense<0.000000e+00> : vector<24x128xf32>
    %5 = tpu.matmul %3, %4, %cst_7 {dimension_numbers = #tpu.dot_dimension_numbers<[1], [0], [0], [1], [0, 0, 1, 1], [], []>} : vector<24x32xbf16>, vector<32x128xbf16>, vector<24x128xf32> -> vector<24x128xf32>
    %6 = arith.addf %2, %5 : vector<24x128xf32>
    %c0_8 = arith.constant 0 : index
    %c0_9 = arith.constant 0 : index
    %7 = vector.load %arg3[%c0_8, %c0_9] : memref<24x8xf32, #tpu.memory_space<vmem>>, vector<24x8xf32>
    %c0_10 = arith.constant 0 : index
    %c0_11 = arith.constant 0 : index
    %8 = vector.load %arg7[%c0_10, %c0_11] : memref<8x128xf32, #tpu.memory_space<vmem>>, vector<8x128xf32>
    %cst_12 = arith.constant dense<0.000000e+00> : vector<24x128xf32>
    %9 = tpu.matmul %7, %8, %cst_12 {dimension_numbers = #tpu.dot_dimension_numbers<[1], [0], [0], [1], [0, 0, 1, 1], [], []>} : vector<24x8xf32>, vector<8x128xf32>, vector<24x128xf32> -> vector<24x128xf32>
    %10 = arith.addf %6, %9 : vector<24x128xf32>
    %cst_13 = arith.constant 0.000000e+00 : f32
    %11 = vector.broadcast %cst_13 : f32 to vector<24x128xf32>
    %12 = arith.maximumf %10, %11 : vector<24x128xf32>
    %13 = arith.truncf %12 : vector<24x128xf32> to vector<24x128xbf16>
    %c0_14 = arith.constant 0 : index
    %c0_15 = arith.constant 0 : index
    %14 = vector.load %arg8[%c0_14, %c0_15] : memref<128x256xbf16, #tpu.memory_space<vmem>>, vector<128x256xbf16>
    %cst_16 = arith.constant dense<0.000000e+00> : vector<24x256xf32>
    %15 = tpu.matmul %13, %14, %cst_16 {dimension_numbers = #tpu.dot_dimension_numbers<[1], [0], [0], [1], [0, 0, 1, 1], [], []>} : vector<24x128xbf16>, vector<128x256xbf16>, vector<24x256xf32> -> vector<24x256xf32>
    %16 = vector.extract_strided_slice %15 {offsets = [0, 0], sizes = [24, 128], strides = [1, 1]} : vector<24x256xf32> to vector<24x128xf32>
    %17 = math.tanh %16 : vector<24x128xf32>
    %18 = vector.extract_strided_slice %15 {offsets = [0, 128], sizes = [24, 128], strides = [1, 1]} : vector<24x256xf32> to vector<24x128xf32>
    %19 = arith.negf %18 : vector<24x128xf32>
    %20 = math.exp %19 : vector<24x128xf32>
    %cst_17 = arith.constant 1.000000e+00 : f32
    %21 = vector.broadcast %cst_17 : f32 to vector<24x128xf32>
    %22 = arith.addf %21, %20 : vector<24x128xf32>
    %23 = arith.divf %21, %22 : vector<24x128xf32>
    %24 = arith.mulf %23, %17 : vector<24x128xf32>
    %25 = arith.truncf %24 : vector<24x128xf32> to vector<24x128xbf16>
    %c0_18 = arith.constant 0 : index
    %c0_19 = arith.constant 0 : index
    %26 = vector.load %arg9[%c0_18, %c0_19] : memref<128x128xbf16, #tpu.memory_space<vmem>>, vector<128x128xbf16>
    %cst_20 = arith.constant dense<0.000000e+00> : vector<24x128xf32>
    %27 = tpu.matmul %25, %26, %cst_20 {dimension_numbers = #tpu.dot_dimension_numbers<[1], [0], [0], [1], [0, 0, 1, 1], [], []>} : vector<24x128xbf16>, vector<128x128xbf16>, vector<24x128xf32> -> vector<24x128xf32>
    %c0_21 = arith.constant 0 : index
    %c0_22 = arith.constant 0 : index
    %28 = vector.load %arg10[%c0_21, %c0_22] : memref<8x128xf32, #tpu.memory_space<vmem>>, vector<1x128xf32>
    %29 = vector.broadcast %28 : vector<1x128xf32> to vector<24x128xf32>
    %30 = arith.addf %27, %29 : vector<24x128xf32>
    %cst_23 = arith.constant dense<0xFF800000> : vector<24xf32>
    %31 = vector.multi_reduction <maximumf>, %30, %cst_23 [1] : vector<24x128xf32> to vector<24xf32>
    %32 = vector.shape_cast %31 : vector<24xf32> to vector<24x1xf32>
    %33 = vector.broadcast %32 : vector<24x1xf32> to vector<24x128xf32>
    %34 = arith.subf %30, %33 : vector<24x128xf32>
    %35 = math.exp %34 : vector<24x128xf32>
    %cst_24 = arith.constant dense<0.000000e+00> : vector<24xf32>
    %36 = vector.multi_reduction <add>, %35, %cst_24 [1] : vector<24x128xf32> to vector<24xf32>
    %37 = vector.shape_cast %36 : vector<24xf32> to vector<24x1xf32>
    %38 = math.log %37 : vector<24x1xf32>
    %39 = arith.addf %32, %38 : vector<24x1xf32>
    %40 = vector.extract_strided_slice %30 {offsets = [0, 0], sizes = [24, 1], strides = [1, 1]} : vector<24x128xf32> to vector<24x1xf32>
    %41 = vector.extract_strided_slice %30 {offsets = [0, 1], sizes = [24, 1], strides = [1, 1]} : vector<24x128xf32> to vector<24x1xf32>
    %c0_25 = arith.constant 0 : index
    %c0_26 = arith.constant 0 : index
    %42 = vector.load %arg4[%c0_25, %c0_26] : memref<24x1xi32, #tpu.memory_space<vmem>>, vector<24x1xi32>
    %c1_i32 = arith.constant 1 : i32
    %43 = vector.broadcast %c1_i32 : i32 to vector<24x1xi32>
    %44 = arith.cmpi eq, %42, %43 : vector<24x1xi32>
    %45 = arith.select %44, %41, %40 : vector<24x1xi1>, vector<24x1xf32>
    %46 = arith.subf %39, %45 : vector<24x1xf32>
    %c0_27 = arith.constant 0 : index
    %c0_28 = arith.constant 0 : index
    %47 = vector.load %arg11[%c0_27, %c0_28] : memref<24x1xf32, #tpu.memory_space<vmem>>, vector<24x1xf32>
    tpu.vector_store %arg11[%c0_27, %c0_28], %46 {strides = array<i32>} : memref<24x1xf32, #tpu.memory_space<vmem>>, vector<24x1xf32>,
    %48 = arith.cmpf ogt, %41, %40 : vector<24x1xf32>
    %49 = arith.extui %48 : vector<24x1xi1> to vector<24x1xi32>
    %50 = arith.cmpi eq, %49, %42 : vector<24x1xi32>
    %51 = arith.extui %50 : vector<24x1xi1> to vector<24x1xi32>
    %52 = arith.sitofp %51 : vector<24x1xi32> to vector<24x1xf32>
    %c0_29 = arith.constant 0 : index
    %c0_30 = arith.constant 0 : index
    %53 = vector.load %arg12[%c0_29, %c0_30] : memref<24x1xf32, #tpu.memory_space<vmem>>, vector<24x1xf32>
    tpu.vector_store %arg12[%c0_29, %c0_30], %52 {strides = array<i32>} : memref<24x1xf32, #tpu.memory_space<vmem>>, vector<24x1xf32>,
    return
  }
  func.func @transform_0(%arg0: i32) -> (i32, i32) {
    %c0_i32 = arith.constant 0 : i32
    %c0_i32_0 = arith.constant 0 : i32
    return %arg0, %c0_i32 : i32, i32
  }
  func.func @transform_1(%arg0: i32) -> (i32, i32) {
    %c0_i32 = arith.constant 0 : i32
    %c0_i32_0 = arith.constant 0 : i32
    return %arg0, %c0_i32 : i32, i32
  }
  func.func @transform_2(%arg0: i32) -> (i32, i32) {
    %c0_i32 = arith.constant 0 : i32
    %c0_i32_0 = arith.constant 0 : i32
    return %arg0, %c0_i32 : i32, i32
  }
  func.func @transform_3(%arg0: i32) -> (i32, i32) {
    %c0_i32 = arith.constant 0 : i32
    %c0_i32_0 = arith.constant 0 : i32
    return %arg0, %c0_i32 : i32, i32
  }
  func.func @transform_4(%arg0: i32) -> (i32, i32) {
    %c0_i32 = arith.constant 0 : i32
    %c0_i32_0 = arith.constant 0 : i32
    %c0_i32_1 = arith.constant 0 : i32
    return %c0_i32, %c0_i32_0 : i32, i32
  }
  func.func @transform_5(%arg0: i32) -> (i32, i32) {
    %c0_i32 = arith.constant 0 : i32
    %c0_i32_0 = arith.constant 0 : i32
    %c0_i32_1 = arith.constant 0 : i32
    return %c0_i32, %c0_i32_0 : i32, i32
  }
  func.func @transform_6(%arg0: i32) -> (i32, i32) {
    %c0_i32 = arith.constant 0 : i32
    %c0_i32_0 = arith.constant 0 : i32
    %c0_i32_1 = arith.constant 0 : i32
    return %c0_i32, %c0_i32_0 : i32, i32
  }
  func.func @transform_7(%arg0: i32) -> (i32, i32) {
    %c0_i32 = arith.constant 0 : i32
    %c0_i32_0 = arith.constant 0 : i32
    %c0_i32_1 = arith.constant 0 : i32
    return %c0_i32, %c0_i32_0 : i32, i32
  }
  func.func @transform_8(%arg0: i32) -> (i32, i32) {
    %c0_i32 = arith.constant 0 : i32
    %c0_i32_0 = arith.constant 0 : i32
    %c0_i32_1 = arith.constant 0 : i32
    return %c0_i32, %c0_i32_0 : i32, i32
  }
  func.func @transform_9(%arg0: i32) -> (i32, i32) {
    %c0_i32 = arith.constant 0 : i32
    %c0_i32_0 = arith.constant 0 : i32
    %c0_i32_1 = arith.constant 0 : i32
    return %c0_i32, %c0_i32_0 : i32, i32
  }
  func.func @transform_10(%arg0: i32) -> (i32, i32) {
    %c0_i32 = arith.constant 0 : i32
    %c0_i32_0 = arith.constant 0 : i32
    return %arg0, %c0_i32 : i32, i32
  }
  func.func @transform_11(%arg0: i32) -> (i32, i32) {
    %c0_i32 = arith.constant 0 : i32
    %c0_i32_0 = arith.constant 0 : i32
    return %arg0, %c0_i32 : i32, i32
  }
}

</mosaic_0001>

<bundles_post_ra>
// kernel: tpu_custom_call.1
= control target key start
LH: loop header
LB: loop body
LE: loop exit
PB: predicated region body
PF: predicated region fallthrough
CT: control target
= control target key end

     0   :  { %17 = vsyncpa [#allocation3], 0  ;;  %s1505_s17 = smov 0   ;;  %s1652_s0 = inlined_call_operand.vmem [shape: bf16[48,16], index: 0, kind: input, shape index: {}]   ;;  %s1653_s1 = inlined_call_operand.vmem [shape: bf16[48,32], index: 1, kind: input, shape index: {}]   ;;  %s1654_s2 = inlined_call_operand.vmem [shape: f32[48,8], index: 2, kind: input, shape index: {}]   ;;  %s1655_s3 = inlined_call_operand.vmem [shape: s32[48,1], index: 3, kind: input, shape index: {}]   ;;  %s1656_s4 = inlined_call_operand.vmem [shape: bf16[16,128], index: 4, kind: input, shape index: {}]   ;;  %s1657_s5 = inlined_call_operand.vmem [shape: bf16[32,128], index: 5, kind: input, shape index: {}]   ;;  %s1658_s6 = inlined_call_operand.vmem [shape: f32[8,128], index: 6, kind: input, shape index: {}]   ;;  %s1659_s7 = inlined_call_operand.hbm [shape: bf16[128,256], index: 7, kind: input, shape index: {}]   ;;  %s1660_s8 = inlined_call_operand.vmem [shape: bf16[128,128], index: 8, kind: input, shape index: {}]   ;;  %s1661_s9 = inlined_call_operand.vmem [shape: f32[8,128], index: 9, kind: input, shape index: {}]   ;;  %s1662_s10 = inlined_call_operand.vmem [shape: f32[48,1], index: 10, kind: output, shape index: {0}]   ;;  %s1663_s11 = inlined_call_operand.vmem [shape: f32[48,1], index: 11, kind: output, shape index: {1}]  }
   0x1 LB: > { %s330_s20 = sshll.u32 %s1659_s7, 4  ;;  %s1154_s21 = sadd.s32 4294967295, %s1436_s17   ;;  %s1436_s17 = sphi %s1505_s17, %s23_s17   ;;  %s331_s20 = int_to_ptr.hbm [resolvable:$true] %s330_s20 }
   0x2   : > { %p1156_p0 = scmp.ge.s32.totalorder %s1436_s17, 1  ;;  %p310_p1 = scmp.lt.s32.totalorder %s1436_s17, 3 }
   0x3   : > { %p1343_p2 = scmp.eq.s32.totalorder %s1154_s21, 0  ;;  %s1438_s22 = smov [#allocation2]  }
   0x4   : > { %p311_p3 = pnand %p1156_p0, %p310_p1  ;;  %s332_s23 = sshll.u32 %s1438_s22, 4  ;;  %s333_s23 = int_to_ptr.vmem [resolvable:$true] %s332_s23 }
   0x5   : > { %s1439_s24 = smov 128   ;;  %s1440_s25 = smov 8  }
   0x6   : > { %p1339_p4 = pneg %p311_p3  ;;  %390 = sbr.rel (%p311_p3) target bundleno = 746 (0x2ea), region = 60 }
   0x8   : > { %p1340_p5 = pnand %p1343_p2, %p1339_p4 }
   0xa   : > { %1342 = dma.hbm_to_vmem [thread:$0]  (!%p1340_p5), %s331_s20, 2048, %s333_s23, [#allocation3], %s1439_s24, %s1439_s24, %s1440_s25  }
   0xb   : > { %1431 = dma.done.wait (%p1343_p2), [#allocation3], 2048  }
   0xc   : > { %1433 = vsyncadd (%p1343_p2), [#allocation3], 4294965248  ;;  %s451_s26 = smul.u32 3, %s1154_s21  ;;  %v1302_v0 = vld [vmem:[%s1657_s5 + $0x8] sm:$0xff]  ;;  %v1299_v1 = vld [vmem:[%s1656_s4] sm:$0xff]  ;;  %vm588_vm0 = vcmask 64512  }
   0xd   : > { %v587_v2 = vld [vmem:[%s1658_s6] sm:$0xff]  ;;  %533 = vmatpush.bf16.msra.mxu0 %v1302_v0  ;;  %573 = vmatpush.bf16.msra.mxu1 %v1299_v1  ;;  %vm559_vm1 = vcmask 130048   ;;  %v1252_v7 = vld [vmem:[#allocation2 + $0x70] sm:$0xf]  ;;  %v1318_v8 = vld [vmem:[#allocation2 + $0x74] sm:$0xf0] }
   0xe   : > { %p452_p6 = scmp.lt.s32.totalorder %s451_s26, 5  ;;  %613 = vmatpush.msra.mxu2 %v587_v2  ;;  %v1301_v5 = vld [vmem:[%s1657_s5] sm:$0xff]  ;;  %v1317_v9 = vld [vmem:[#allocation2 + $0x74] sm:$0xf]  ;;  %v1254_v10 = vld [vmem:[#allocation2 + $0x78] sm:$0xf0]  ;;  %v1253_v11 = vor.u32 %v1318_v8, %v1252_v7 }
   0xf   : > { %v1257_v12 = vor.u32 %v1317_v9, %v1254_v10  ;;  %v1244_v13 = vld [vmem:[#allocation2 + $0x60] sm:$0xf]  ;;  %v1316_v14 = vld [vmem:[#allocation2 + $0x64] sm:$0xf0]  ;;  %v1315_v15 = vld [vmem:[#allocation2 + $0x64] sm:$0xf] }
  0x10   : > { %s1665_s26 = smov (!%p452_p6, %s451_s26), 5  ;;  %vm520_vm2 = vcmask 261120   ;;  %v1246_v16 = vld [vmem:[#allocation2 + $0x68] sm:$0xf0]  ;;  %728 = vmatpush.bf16.msra.mxu3 %v1253_v11  ;;  %v1245_v17 = vor.u32 %v1316_v14, %v1244_v13  ;;  %v1236_v20 = vld [vmem:[#allocation2 + $0x50] sm:$0xf] }
  0x11   : > { %s1161_s27 = sshll.u32 %s1665_s26, 2  ;;  %s1516_s28 = sshll.u32 %s1665_s26, 3  ;;  %534 = vmatpush.bf16.msra.mxu0 %v1301_v5  ;;  %746 = vmatpush.bf16.msrb.mxu2 %v1257_v12  ;;  %v1249_v19 = vor.u32 %v1315_v15, %v1246_v16  ;;  %v1314_v21 = vld [vmem:[#allocation2 + $0x54] sm:$0xf0]  ;;  %v1313_v22 = vld [vmem:[#allocation2 + $0x54] sm:$0xf] }
  0x12   : > { %s1530_s19 = scalar_lea.vmem %s1652_s0, %s1161_s27  ;;  %s1536_s22 = scalar_lea.vmem %s1654_s2, %s1516_s28  ;;  %v1238_v23 = vld [vmem:[#allocation2 + $0x58] sm:$0xf0]  ;;  %v1237_v25 = vor.u32 %v1314_v21, %v1236_v20  ;;  %v1228_v33 = vld [vmem:[#allocation2 + $0x40] sm:$0xf]  ;;  %v1312_v34 = vld [vmem:[#allocation2 + $0x44] sm:$0xf0] }
  0x13   : > { %v1298_v3 = vld [vmem:[%s1530_s19] sm:$0xff]  ;;  %s1543_s25 = scalar_lea.vmem %s1653_s1, %s1161_s27  ;;  %v585_v18 = vld [vmem:[%s1536_s22 + $0x8] sm:$0xff]  ;;  %v1241_v26 = vor.u32 %v1313_v22, %v1238_v23  ;;  %v586_v29 = vld [vmem:[%s1536_s22 + $0x10] sm:$0xff]  ;;  %v1229_v36 = vor.u32 %v1312_v34, %v1228_v33  ;;  %s1588_s30 = scalar_lea.vmem %s1655_s3, %s1516_s28 }
  0x14   : > { %v584_v4 = vld [vmem:[%s1536_s22] sm:$0xff]  ;;  %1189 = vmatmul.msk.bf16.vlgmr.msra.gmra.mxu1 %vm559_vm1, %v1298_v3  ;;  %v490_v24 = vld [vmem:[%s1530_s19 + $0x8] sm:$0xf]  ;;  %729 = vmatpush.bf16.msra.mxu3 %v1245_v17  ;;  %v1230_v37 = vld [vmem:[#allocation2 + $0x48] sm:$0xf0]  ;;  %s1441_s12 = smov 1   ;;  %s485_s19 = scalar_lea.vmem %s1663_s11, %s1516_s28 }
  0x15   : > { %1191 = vmatmul.msk.f32.vlgmr.msra.gmra.mxu2 %vm588_vm0, %v584_v4  ;;  %v1300_v6 = vld [vmem:[%s1543_s25] sm:$0xff]  ;;  %v550_v27 = vunpack.c.l.b16 %v490_v24  ;;  %v495_v28 = vld [vmem:[%s1543_s25 + $0x8] sm:$0xf]  ;;  %v1220_v39 = vld [vmem:[#allocation2 + $0x30] sm:$0xf]  ;;  %s1442_s15 = smov 127   ;;  %s479_s22 = scalar_lea.vmem %s1662_s10, %s1516_s28 }
  0x16   : > { %1179 = vmatmul.msk.bf16.vlgmr.msra.gmra.mxu0 %vm520_vm2, %v1300_v6  ;;  %747 = vmatpush.bf16.msrb.mxu2 %v1249_v19  ;;  %v505_v30 = vunpack.c.l.b16 %v495_v28  ;;  %v1311_v35 = vld [vmem:[#allocation2 + $0x44] sm:$0xf]  ;;  %v1310_v40 = vld [vmem:[#allocation2 + $0x34] sm:$0xf0]  ;;  %v1309_v41 = vld [vmem:[#allocation2 + $0x34] sm:$0xf] }
  0x17   : > { %v552_v31 = vpack.c.b16 %v550_v27, %v550_v27  ;;  %v1233_v38 = vor.u32 %v1311_v35, %v1230_v37  ;;  %v1221_v42 = vor.u32 %v1310_v40, %v1220_v39  ;;  %v1222_v43 = vld [vmem:[#allocation2 + $0x38] sm:$0xf0]  ;;  %v1212_v45 = vld [vmem:[#allocation2 + $0x20] sm:$0xf]  ;;  %v1308_v46 = vld [vmem:[#allocation2 + $0x24] sm:$0xf0] }
  0x18   : > { %730 = vmatpush.bf16.msra.mxu3 %v1237_v25  ;;  %v507_v32 = vpack.c.b16 %v505_v30, %v505_v30  ;;  %v1225_v44 = vor.u32 %v1309_v41, %v1222_v43  ;;  %v1307_v47 = vld [vmem:[#allocation2 + $0x24] sm:$0xf]  ;;  %v1213_v48 = vor.u32 %v1308_v46, %v1212_v45  ;;  %v1214_v49 = vld [vmem:[#allocation2 + $0x28] sm:$0xf0]  ;;  %v1204_v51 = vld [vmem:[#allocation2 + $0x10] sm:$0xf] }
  0x19   : > { %v1217_v50 = vor.u32 %v1307_v47, %v1214_v49  ;;  %v1306_v52 = vld [vmem:[#allocation2 + $0x14] sm:$0xf0]  ;;  %v1305_v53 = vld [vmem:[#allocation2 + $0x14] sm:$0xf]  ;;  %v1206_v55 = vld [vmem:[#allocation2 + $0x18] sm:$0xf0] }
  0x1a   : > { %748 = vmatpush.bf16.msrb.mxu2 %v1241_v26  ;;  %v1205_v54 = vor.u32 %v1306_v52, %v1204_v51  ;;  %v1209_v56 = vor.u32 %v1305_v53, %v1206_v55  ;;  %v1196_v57 = vld [vmem:[#allocation2] sm:$0xf]  ;;  %v1304_v58 = vld [vmem:[#allocation2 + $0x4] sm:$0xf0]  ;;  %v1303_v59 = vld [vmem:[#allocation2 + $0x4] sm:$0xf] }
  0x1b   : > { %v1197_v60 = vor.u32 %v1304_v58, %v1196_v57  ;;  %v1198_v61 = vld [vmem:[#allocation2 + $0x8] sm:$0xf0]  ;;  %v1326_v21 = vld [vmem:[%s1660_s8 + $0x38] sm:$0xff]  ;;  %v1325_v22 = vld [vmem:[%s1660_s8 + $0x30] sm:$0xff] }
  0x1c   : > { %731 = vmatpush.bf16.msra.mxu3 %v1229_v36  ;;  %v1201_v62 = vor.u32 %v1303_v59, %v1198_v61  ;;  %895 = vmatpush.bf16.msrb.mxu0 %v1326_v21  ;;  %v1324_v23 = vld [vmem:[%s1660_s8 + $0x28] sm:$0xff]  ;;  %v1323_v24 = vld [vmem:[%s1660_s8 + $0x20] sm:$0xff]  ;;  %v1322_v25 = vld [vmem:[%s1660_s8 + $0x18] sm:$0xff] }
  0x1d   : > { %1192 = vmatmul.msk.f32.gmra.mxu2 %vm588_vm0, %v585_v18  ;;  %1327 = vmatpush.bf16.msrb.mxu1 %v1326_v21  ;;  %v1321_v26 = vld [vmem:[%s1660_s8 + $0x10] sm:$0xff]  ;;  %v1591_v41 = vld [vmem:[%s1588_s30 + $0x8] sm:$0xff] }
  0x1e   : > { %749 = vmatpush.bf16.msrb.mxu2 %v1233_v38  ;;  %988 = vrot.lane.b32.xlu2 %v1591_v41, %s1441_s12  ;;  %v1596_v47 = vld [vmem:[%s1588_s30 + $0x10] sm:$0xff] }
  0x20   : > { %732 = vmatpush.bf16.msra.mxu3 %v1221_v42  ;;  %896 = vmatpush.bf16.msrb.mxu0 %v1325_v22 }
  0x21   : > { %1328 = vmatpush.bf16.msrb.mxu1 %v1325_v22  ;;  %v1365_v22 = vld [vmem:[%s1661_s9] ss:$0 sm:$0xff] }
  0x22   : > { %750 = vmatpush.bf16.msrb.mxu2 %v1225_v44 }
  0x24   : > { %1190 = vmatmul.msk.bf16.gmra.mxu1 %vm559_vm1, %v552_v31  ;;  %733 = vmatpush.bf16.msra.mxu3 %v1213_v48  ;;  %v1319_v31 = vld [vmem:[%s1660_s8] sm:$0xff] }
  0x25   : > { %1193 = vmatmul.msk.f32.gmra.mxu2 %vm588_vm0, %v586_v29  ;;  %897 = vmatpush.bf16.msrb.mxu0 %v1324_v23  ;;  %v1320_v29 = vld [vmem:[%s1660_s8 + $0x8] sm:$0xff] }
  0x26   : > { %1180 = vmatmul.msk.bf16.gmra.mxu0 %vm520_vm2, %v507_v32  ;;  %751 = vmatpush.bf16.msrb.mxu2 %v1217_v50 }
  0x27   : > { %1329 = vmatpush.bf16.msrb.mxu1 %v1324_v23  ;;  %990 = vrot.lane.b32.xlu2 %v1596_v47, %s1441_s12 }
  0x28   : > { %734 = vmatpush.bf16.msra.mxu3 %v1205_v54 }
  0x29   : > { %898 = vmatpush.bf16.msrb.mxu0 %v1323_v24 }
  0x2a   : > { %752 = vmatpush.bf16.msrb.mxu2 %v1209_v56 }
  0x2b   : > { %1330 = vmatpush.bf16.msrb.mxu1 %v1323_v24 }
  0x2c   : > { %735 = vmatpush.bf16.msra.mxu3 %v1197_v60 }
  0x2d   : > { %899 = vmatpush.bf16.msrb.mxu0 %v1322_v25 }
  0x2e   : > { %753 = vmatpush.bf16.msrb.mxu2 %v1201_v62 }
  0x2f   : > { %1331 = vmatpush.bf16.msrb.mxu1 %v1322_v25 }
  0x31   : > { %900 = vmatpush.bf16.msrb.mxu0 %v1321_v26 }
  0x33   : > { %1332 = vmatpush.bf16.msrb.mxu1 %v1321_v26 }
  0x35   : > { %901 = vmatpush.bf16.msrb.mxu0 %v1320_v29 }
  0x37   : > { %1333 = vmatpush.bf16.msrb.mxu1 %v1320_v29 }
  0x39   : > { %902 = vmatpush.bf16.msrb.mxu0 %v1319_v31 }
  0x3b   : > { %1334 = vmatpush.bf16.msrb.mxu1 %v1319_v31 }
  0x78   : > { %v989_v31 = vpop.permute.xlu2 %988 }
  0x91   : > { %v575_v63 = vpop.f32.mrf.mxu1 }
  0x93   : > { %v536_v0 = vpop.f32.mrf.mxu0 }
  0x94   : > { %v576_v3 = vadd.f32 %v575_v63, %v536_v0 }
  0x98   : > { %v615_v1 = vpop.f32.mrf.mxu2 }
  0x99   : > { %v577_v2 = vpop.f32.mrf.mxu1  ;;  %v624_v6 = vadd.f32 %v615_v1, %v576_v3 }
  0x9b   : > { %v538_v4 = vpop.f32.mrf.mxu0  ;;  %v627_v10 = vmax.f32 %v624_v6, 0.0 }
  0x9c   : > { %v578_v7 = vadd.f32 %v577_v2, %v538_v4 }
  0xa0   : > { %v618_v5 = vpop.f32.mrf.mxu2 }
  0xa1   : > { %v625_v8 = vadd.f32 %v618_v5, %v578_v7  ;;  %v580_v9 = vpop.f32.mrf.mxu1 }
  0xa3   : > { %v628_v11 = vmax.f32 %v625_v8, 0.0  ;;  %v541_v13 = vpop.f32.mrf.mxu0 }
  0xa4   : > { %v581_v14 = vadd.f32 %v580_v9, %v541_v13 }
  0xa5   : > { %v630_v12 = vpack.c.bf16 %v628_v11, %v627_v10 }
  0xa7   : > { %736 = vmatmul.bf16.vlgmr.msra.gmra.mxu3 %v630_v12  ;;  %754 = vmatmul.bf16.vlgmr.msrb.gmra.mxu2 %v630_v12 }
  0xa8   : > { %v621_v15 = vpop.f32.mrf.mxu2 }
  0xa9   : > { %v582_v16 = vpop.f32.mrf.mxu1  ;;  %v626_v17 = vadd.f32 %v621_v15, %v581_v14 }
  0xab   : > { %v543_v18 = vpop.f32.mrf.mxu0  ;;  %v629_v19 = vmax.f32 %v626_v17, 0.0 }
  0xad   : > { %v631_v20 = vpack.c.bf16 %v629_v19, %v629_v19 }
  0xb7   : > { %741 = vmatmul.bf16.gmra.mxu3 %v631_v20  ;;  %759 = vmatmul.bf16.gmra.mxu2 %v631_v20 }
 0x12a   : > { %v737_v27 = vpop.f32.mrf.mxu3  ;;  %v755_v28 = vpop.f32.mrf.mxu2 }
 0x12b   : > { %v1258_v30 = vmul.f32 -1.442695, %v755_v28 }
 0x12d   : > { %1366 = vpow2.f32 %v1258_v30  ;;  %v943_v30 = vld [vmem:[%s1588_s30] sm:$0xff] }
 0x12e   : > { %vm946_vm15 = vcmp.eq.s32.totalorder %v943_v30, 1 }
 0x132   : > { %v739_v32 = vpop.f32.mrf.mxu3  ;;  %v757_v33 = vpop.f32.mrf.mxu2 }
 0x133   : > { %v1367_v34 = vpop.eup %1366  ;;  %v1259_v35 = vmul.f32 -1.442695, %v757_v33 }
 0x134   : > { %v776_v36 = vadd.f32 1.0, %v1367_v34 }
 0x135   : > { %1368 = vpow2.f32 %v1259_v35 }
 0x136   : > { %1370 = vrcp.f32 %v776_v36  ;;  %v790_v55 = vand.u32 2147483648, %v776_v36  ;;  %vm784_vm4 = vweird.f32 %v776_v36  ;;  %v788_v57 = vand.u32 2147483647, %v776_v36 }
 0x138   : > { %v791_v62 = vor.u32 1.1754944e-38, %v790_v55  ;;  %vm789_vm7 = vcmp.eq.f32.partialorder %v788_v57, 8.507059e+37  ;;  %v1444_v57 = vmov 0.0  }
 0x13a   : > { %v742_v37 = vpop.f32.mrf.mxu3  ;;  %v760_v38 = vpop.f32.mrf.mxu2 }
 0x13b   : > { %v1369_v39 = vpop.eup %1368  ;;  %v1260_v40 = vmul.f32 -1.442695, %v760_v38 }
 0x13c   : > { %v1371_v42 = vpop.eup %1370  ;;  %v777_v43 = vadd.f32 1.0, %v1369_v39 }
 0x13d   : > { %v780_v44 = vmul.f32 %v1371_v42, %v776_v36  ;;  %1372 = vpow2.f32 %v1260_v40  ;;  %vm785_vm3 = vweird.f32 %v1371_v42 }
 0x13e   : > { %1374 = vrcp.f32 %v777_v43  ;;  %vm786_vm5 = vmor %vm784_vm4, %vm785_vm3  ;;  %v805_v58 = vand.u32 2147483648, %v777_v43  ;;  %v803_v61 = vand.u32 2147483647, %v777_v43  ;;  %vm799_vm8 = vweird.f32 %v777_v43 }
 0x13f   : > { %v781_v45 = vsub.f32 1.0, %v780_v44 }
 0x140   : > { %v806_v2 = vor.u32 1.1754944e-38, %v805_v58  ;;  %vm804_vm10 = vcmp.eq.f32.partialorder %v803_v61, 8.507059e+37 }
 0x141   : > { %v782_v46 = vmul.f32 %v1371_v42, %v781_v45 }
 0x142   : > { %v744_v48 = vpop.f32.mrf.mxu3  ;;  %v762_v49 = vpop.f32.mrf.mxu2 }
 0x143   : > { %v1373_v50 = vpop.eup %1372  ;;  %v783_v54 = vadd.f32 %v1371_v42, %v782_v46 }
 0x144   : > { %v1375_v51 = vpop.eup %1374  ;;  %v778_v52 = vadd.f32 1.0, %v1373_v50 }
 0x145   : > { %v795_v53 = vmul.f32 %v1375_v51, %v777_v43  ;;  %v787_v59 = vsel %vm786_vm5, %v1371_v42, %v783_v54  ;;  %vm800_vm6 = vweird.f32 %v1375_v51 }
 0x146   : > { %1376 = vrcp.f32 %v778_v52  ;;  %v792_v1 = vsel %vm789_vm7, %v791_v62, %v787_v59  ;;  %vm801_vm9 = vmor %vm799_vm8, %vm800_vm6  ;;  %vm814_vm11 = vweird.f32 %v778_v52  ;;  %v820_v11 = vand.u32 2147483648, %v778_v52 }
 0x147   : > { %1378 = vtanh.f32 %v737_v27  ;;  %v796_v56 = vsub.f32 1.0, %v795_v53  ;;  %v818_v14 = vand.u32 2147483647, %v778_v52  ;;  %vm967_vm6 = vcmask 7168  }
 0x148   : > { %1380 = vtanh.f32 %v739_v32  ;;  %v821_v16 = vor.u32 1.1754944e-38, %v820_v11  ;;  %v991_v32 = vpop.permute.xlu2 %990  ;;  %vm948_vm7 = vcmp.eq.s32.totalorder %v1596_v47, 1  ;;  %vm947_vm8 = vcmp.eq.s32.totalorder %v1591_v41, 1 }
 0x149   : > { %v797_v60 = vmul.f32 %v1375_v51, %v796_v56  ;;  %1382 = vtanh.f32 %v742_v37  ;;  %vm819_vm14 = vcmp.eq.f32.partialorder %v818_v14, 8.507059e+37 }
 0x14b   : > { %v798_v63 = vadd.f32 %v1375_v51, %v797_v60 }
 0x14c   : > { %v1377_v0 = vpop.eup %1376 }
 0x14d   : > { %v1379_v3 = vpop.eup %1378  ;;  %v810_v4 = vmul.f32 %v1377_v0, %v778_v52  ;;  %v802_v5 = vsel %vm801_vm9, %v1375_v51, %v798_v63  ;;  %vm815_vm12 = vweird.f32 %v1377_v0  ;;  %v1443_v51 = vmov 0  }
 0x14e   : > { %v1381_v6 = vpop.eup %1380  ;;  %v807_v7 = vsel %vm804_vm10, %v806_v2, %v802_v5  ;;  %v824_v9 = vmul.f32 %v1379_v3, %v792_v1  ;;  %vm816_vm13 = vmor %vm814_vm11, %vm815_vm12 }
 0x14f   : > { %v811_v8 = vsub.f32 1.0, %v810_v4  ;;  %v825_v10 = vmul.f32 %v1381_v6, %v807_v7  ;;  %v1383_v18 = vpop.eup %1382 }
 0x151   : > { %v827_v12 = vpack.c.bf16 %v825_v10, %v824_v9  ;;  %v812_v13 = vmul.f32 %v1377_v0, %v811_v8 }
 0x153   : > { %903 = vmatmul.bf16.vlgmr.msrb.gmra.mxu0 %v827_v12  ;;  %v813_v15 = vadd.f32 %v1377_v0, %v812_v13 }
 0x155   : > { %v817_v17 = vsel %vm816_vm13, %v1377_v0, %v813_v15 }
 0x156   : > { %v822_v19 = vsel %vm819_vm14, %v821_v16, %v817_v17 }
 0x157   : > { %v826_v20 = vmul.f32 %v1383_v18, %v822_v19 }
 0x159   : > { %v828_v21 = vpack.c.bf16 %v826_v20, %v826_v20 }
 0x15b   : > { %908 = vmatmul.bf16.vlgmr.msrb.gmra.mxu1 %v828_v21 }
 0x1d0   : > { %v904_v23 = vpop.f32.mrf.mxu0 }
 0x1d1   : > { %v905_v24 = vadd.f32 %v1365_v22, %v904_v23 }
 0x1d3   : > { %952 = vrot.lane.b32.xlu2 %v905_v24, %s1442_s15  ;;  %913 = vmax.xlane.f32.xlu0 %v905_v24 }
 0x1d8   : > { %v906_v25 = vpop.f32.mrf.mxu0  ;;  %v909_v26 = vpop.f32.mrf.mxu1 }
 0x1d9   : > { %v1604_v27 = vadd.f32 %v1365_v22, %v906_v25  ;;  %v1606_v28 = vadd.f32 %v1365_v22, %v909_v26 }
 0x1db   : > { %973 = vrot.lane.b32.xlu2 %v1604_v27, %s1441_s12  ;;  %915 = vmax.xlane.f32.xlu0 %v1604_v27 }
 0x1dc   : > { %917 = vmax.xlane.f32.xlu1 %v1606_v28 }
 0x1e0   : > { %v911_v29 = vpop.f32.mrf.mxu1 }
 0x1e3   : > { %975 = vrot.lane.b32.xlu2 %v1606_v28, %s1441_s12 }
 0x1ef   : > { %986 = vrot.lane.b32.xlu0 %v943_v30, %s1441_s12 }
 0x1f5   : > { %971 = vrot.lane.b32.xlu1 %v905_v24, %s1441_s12 }
 0x1f7   : > { %956 = vrot.lane.b32.xlu0 %v1606_v28, %s1442_s15 }
 0x22d   : > { %v953_v33 = vpop.permute.xlu2 %952 }
 0x22e   : > { %v961_v34 = vsel %vm946_vm15, %v953_v33, %v905_v24 }
 0x235   : > { %v974_v46 = vpop.permute.xlu2 %973 }
 0x236   : > { %vm981_vm0 = vcmp.gt.f32.partialorder %v1604_v27, %v974_v46 }
 0x237   : > { %v984_v52 = vsel %vm981_vm0, 1, %v1443_v51 }
 0x238   : > { %vm993_vm2 = vcmp.eq.s32.totalorder %v984_v52, %v989_v31 }
 0x239   : > { %v1294_v58 = vsel %vm993_vm2, 1.0, %v1444_v57 }
 0x23d   : > { %v976_v50 = vpop.permute.xlu2 %975 }
 0x23e   : > { %vm982_vm1 = vcmp.gt.f32.partialorder %v1606_v28, %v976_v50 }
 0x23f   : > { %v985_v54 = vsel %vm982_vm1, 1, %v1443_v51 }
 0x240   : > { %vm994_vm5 = vcmp.eq.s32.totalorder %v985_v54, %v991_v32 }
 0x241   : > { %v1295_v61 = vsel %vm994_vm5, 1.0, %v1444_v57 }
 0x246   : > { %v914_v35 = vpop.xlane.xlu0 %913 }
 0x247   : > { %v919_v36 = vsub.f32 %v905_v24, %v914_v35 }
 0x249   : > { %v922_v37 = vmul.f32 1.442695, %v919_v36 }
 0x24b   : > { %1384 = vpow2.f32 %v922_v37 }
 0x24e   : > { %v1619_v38 = vpop.xlane.xlu0 %915 }
 0x24f   : > { %v920_v39 = vsub.f32 %v1604_v27, %v1619_v38  ;;  %v918_v40 = vpop.xlane.xlu1 %917 }
 0x250   : > { %v921_v42 = vsub.f32 %v1606_v28, %v918_v40 }
 0x251   : > { %v1385_v43 = vpop.eup %1384  ;;  %v924_v44 = vmul.f32 1.442695, %v920_v39 }
 0x252   : > { %v926_v45 = vmul.f32 1.442695, %v921_v42  ;;  %928 = vadd.xlane.f32.xlu2 %v1385_v43 }
 0x253   : > { %1386 = vpow2.f32 %v924_v44 }
 0x254   : > { %1388 = vpow2.f32 %v926_v45 }
 0x259   : > { %v1387_v48 = vpop.eup %1386 }
 0x25a   : > { %v1389_v49 = vpop.eup %1388  ;;  %930 = vadd.xlane.f32.xlu1 %v1387_v48 }
 0x25b   : > { %932 = vadd.xlane.f32.xlu0 %v1389_v49 }
 0x261   : > { %v987_v55 = vpop.permute.xlu0 %986 }
 0x267   : > { %v972_v53 = vpop.permute.xlu1 %971 }
 0x268   : > { %vm980_vm3 = vcmp.gt.f32.partialorder %v905_v24, %v972_v53 }
 0x269   : > { %v983_v56 = vsel %vm980_vm3, 1, %v1443_v51  ;;  %v957_v63 = vpop.permute.xlu0 %956 }
 0x26a   : > { %vm992_vm4 = vcmp.eq.s32.totalorder %v983_v56, %v987_v55  ;;  %v963_v12 = vsel %vm948_vm7, %v957_v63, %v1606_v28 }
 0x26b   : > { %v1293_v59 = vsel %vm992_vm4, 1.0, %v1444_v57 }
 0x26c   : > { %v1360_v60 = vpack.i.bf16 %v1294_v58, %v1293_v59 }
 0x26e   : > { %1361 = vrot.lane.b32.xlu2 %v1360_v60, %s1442_s15 }
 0x26f   : > { %1008 = vrot.lane.b32.xlu0 %v1295_v61, %s1442_s15 }
 0x273   : > { %954 = vrot.lane.b32.xlu1 %v1604_v27, %s1442_s15 }
 0x2c5   : > { %v929_v62 = vpop.xlane.xlu2 %928 }
 0x2c6   : > { %1390 = vlog2.f32 %v929_v62 }
 0x2cc   : > { %v1391_v0 = vpop.eup %1390 }
 0x2cd   : > { %v935_v1 = vmul.f32 0.6931472, %v1391_v0  ;;  %v1362_v2 = vpop.permute.xlu2 %1361  ;;  %v931_v9 = vpop.xlane.xlu1 %930 }
 0x2ce   : > { %v933_v3 = vpop.xlane.xlu0 %932  ;;  %v1364_v4 = vunpack.i.h.bf16 %v1362_v2  ;;  %v1363_v5 = vunpack.i.l.bf16 %v1362_v2 }
 0x2cf   : > { %v940_v6 = vadd.f32 %v935_v1, %v914_v35  ;;  %1392 = vlog2.f32 %v933_v3 }
 0x2d0   : > { %1013 = vst.msk [vmem:[%s485_s19] sm:$0xff] %vm967_vm6, %v1363_v5  ;;  %1394 = vlog2.f32 %v931_v9 }
 0x2d1   : > { %v964_v7 = vsub.f32 %v940_v6, %v961_v34  ;;  %1014 = vst.msk [vmem:[%s485_s19 + $0x8] sm:$0xff] %vm967_vm6, %v1364_v4 }
 0x2d3   : > { %968 = vst.msk [vmem:[%s479_s22] sm:$0xff] %vm967_vm6, %v964_v7 }
 0x2d5   : > { %v1393_v8 = vpop.eup %1392 }
 0x2d6   : > { %v939_v10 = vmul.f32 0.6931472, %v1393_v8  ;;  %v1395_v14 = vpop.eup %1394 }
 0x2d7   : > { %v937_v15 = vmul.f32 0.6931472, %v1395_v14 }
 0x2d8   : > { %v942_v11 = vadd.f32 %v939_v10, %v918_v40 }
 0x2d9   : > { %v941_v17 = vadd.f32 %v937_v15, %v1619_v38 }
 0x2da   : > { %v966_v13 = vsub.f32 %v942_v11, %v963_v12 }
 0x2dc   : > { %970 = vst.msk [vmem:[%s479_s22 + $0x10] sm:$0xff] %vm967_vm6, %v966_v13 }
 0x2e1   : > { %v1009_v16 = vpop.permute.xlu0 %1008 }
 0x2e2   : > { %1015 = vst.msk [vmem:[%s485_s19 + $0x10] sm:$0xff] %vm967_vm6, %v1009_v16 }
 0x2e5   : > { %v955_v18 = vpop.permute.xlu1 %954 }
 0x2e6   : > { %v962_v47 = vsel %vm947_vm8, %v955_v18, %v1604_v27 }
 0x2e7   : > { %v965_v19 = vsub.f32 %v941_v17, %v962_v47 }
 0x2e9   : > { %969 = vst.msk [vmem:[%s479_s22 + $0x8] sm:$0xff] %vm967_vm6, %v965_v19 }
 0x2ea PF: > { %s23_s17 = sadd.s32 1, %s1436_s17  }
 0x2eb   : > { %p20_p7 = scmp.ge.s32.totalorder %s23_s17, 4  }
 0x2ed   :  { %22 = sbr.rel (!%p20_p7) target bundleno = 1 (0x1), region = 116 }
 0x2f2   :  { %1055 = vsyncpa [#allocation3], 1 }
 0x2f3   :  { %1057 = vsyncpa [#allocation3 + $0x1], 1 }

</bundles_post_ra>
